<compile_context>
chip_gen: v5e
topology: v5e:2x2
jax: 0.10.0
libtpu: 0.0.40
codegen_flags: <defaults>
</compile_context>

<pallas_src>
import math

import jax
import jax.numpy as jnp
from jax.experimental import pallas as pl
from jax.experimental.pallas import tpu as pltpu


def _glu_kernel(x_ref, w_ref, b_ref, o_ref):
    # x_ref: (Cin, tT)     one (batch, time-tile) slab, channels on sublanes
    # w_ref: (2*Cout, Cin) fused [map; gate] weight (VMEM-resident, constant idx)
    # b_ref: (2*Cout, 1)   fused bias, f32 (broadcasts over lanes)
    # o_ref: (Cout, tT)
    x = x_ref[...]
    w = w_ref[...]
    if x.dtype != w.dtype:            # static decision: bf16-MXU path for large Cin
        x = x.astype(w.dtype)
    # Single fused MXU dot with f32 accumulation.  For the ragged last time tile
    # the OOB lanes may hold garbage, but each output lane depends only on the
    # same input lane and OOB output lanes are masked on store, so this is safe.
    y = jnp.dot(w, x, preferred_element_type=jnp.float32) + b_ref[...]
    cout = o_ref.shape[0]
    lin, gate = y[:cout, :], y[cout:, :]
    # Bias / sigmoid / gating stay in f32 (v5e VPU/EUP have no bf16); cast at store.
    # NOTE: for genuinely tiny Cin (<~8-16) an unrolled VPU multiply-add over Cin
    # would avoid the K-small MXU dot; only worth it if a bundle dump shows the
    # vextended slot (not HBM) binding.
    o_ref[...] = (lin * jax.nn.sigmoid(gate)).astype(o_ref.dtype)


def glu_forward(x, w_map, b_map, w_gate, b_gate, *,
                target_time_tile=4096,
                vmem_budget_bytes=48 * 1024 * 1024,
                mxu_bf16_min_cin=256):
    """GLU forward matching the PyTorch module.

    Args:
      x:      (B, Cin, *spatial)
      w_map:  (Cout, Cin)  nn.Linear weight of `map`
      b_map:  (Cout,)
      w_gate: (Cout, Cin)  nn.Linear weight of `map_gate`
      b_gate: (Cout,)
      target_time_tile: upper cap on the lane (time) tile.  On v5e (128 MiB VMEM,
        ~0.8 TB/s HBM) raise toward 8192 together with vmem_budget_bytes (~100 MiB);
        keep vmem_budget_bytes <= ~48 MiB on v7x (64 MiB VMEM per TC).
    Returns:
      (B, Cout, *spatial) = map(x) * sigmoid(map_gate(x)) over the channel axis.
    """
    B, Cin = x.shape[0], x.shape[1]
    spatial = x.shape[2:]
    Cout = w_map.shape[0]
    assert w_map.shape == (Cout, Cin) and w_gate.shape == (Cout, Cin)
    assert b_map.shape == (Cout,) and b_gate.shape == (Cout,)
    T = math.prod(spatial) if spatial else 1

    # Flatten spatial dims: contiguous reshape, no transpose / extra HBM pass.
    x3 = x.reshape(B, Cin, T)

    # MXU operand dtype: bf16 once the contraction is big enough for compute to
    # matter (v6e/v7x MXUs are bf16-native; also halves resident weight VMEM).
    use_bf16_mxu = (Cin >= mxu_bf16_min_cin) and x.dtype == jnp.float32
    w_dtype = jnp.bfloat16 if use_bf16_mxu else x.dtype
    w_cat = jnp.concatenate([w_map, w_gate], axis=0).astype(w_dtype)   # (2*Cout, Cin)
    b_cat = jnp.concatenate([b_map, b_gate], axis=0).astype(jnp.float32)
    b_cat = b_cat.reshape(2 * Cout, 1)                                 # (2*Cout, 1) f32

    bytes_x = jnp.dtype(x.dtype).itemsize
    bytes_w = jnp.dtype(w_dtype).itemsize
    bytes_o = jnp.dtype(x.dtype).itemsize

    # ---- VMEM-budgeted, lane-dense time tile (always a multiple of 128) ----
    # Resident blocks (constant index_map); counted double-buffered to be safe.
    # TODO(synk): pipeline_mode=pl.Buffered(1) on the weight/bias specs would
    # halve this if the compiler double-buffers constant-index blocks (v7x).
    resident = 2 * (2 * Cout * Cin * bytes_w + 2 * Cout * 128 * 4)
    # Per-time-column bytes: 2x input buffers + 2x output buffers + the f32
    # (2*Cout, tT) intermediate + slack for the gating temporaries.
    per_col = 2 * Cin * bytes_x + 2 * Cout * bytes_o + 2 * (2 * Cout * 4)
    avail = max(vmem_budget_bytes - resident, 0)
    tT = max(128, (avail // per_col) // 128 * 128)
    tT = int(min(tT,
                 max(128, (target_time_tile // 128) * 128),
                 pl.cdiv(T, 128) * 128))

    # Ragged last tile (T % tT != 0, or T < 128) is handled by Pallas masking:
    # no wrapper pad of x, no output slice -> a single HBM pass in each direction.
    grid = (pl.cdiv(T, tT), B)   # time leads: better 2-TC balance on v7x.

    # TODO(synk): for very large Cout on v7x (64 MiB VMEM), add a third grid axis
    # chunking Cout to bound the resident weight + f32 intermediate.

    out3 = pl.pallas_call(
        _glu_kernel,
        out_shape=jax.ShapeDtypeStruct((B, Cout, T), x.dtype),
        grid=grid,
        in_specs=[
            pl.BlockSpec((pl.Squeezed(), Cin, tT), lambda t, b: (b, 0, t)),
            pl.BlockSpec((2 * Cout, Cin), lambda t, b: (0, 0)),   # VMEM-resident
            pl.BlockSpec((2 * Cout, 1), lambda t, b: (0, 0)),     # VMEM-resident
        ],
        out_specs=pl.BlockSpec((pl.Squeezed(), Cout, tT), lambda t, b: (b, 0, t)),
        compiler_params=pltpu.CompilerParams(
            dimension_semantics=("parallel", "parallel"),
            vmem_limit_bytes=int(vmem_budget_bytes + (8 << 20)),
        ),
    )(x3, w_cat, b_cat)

    return out3.reshape((B, Cout) + spatial)


def _reference(x, w_map, b_map, w_gate, b_gate):
    # Pure-JAX reference of the PyTorch forward (permute -> Linear -> gate -> permute back).
    bshape = (1, -1) + (1,) * (x.ndim - 2)
    lin = jnp.einsum("oc,bc...->bo...", w_map, x) + b_map.reshape(bshape)
    gate = jnp.einsum("oc,bc...->bo...", w_gate, x) + b_gate.reshape(bshape)
    return lin * jax.nn.sigmoid(gate)


if __name__ == "__main__":
    key = jax.random.PRNGKey(0)

    def make_params(k, cin, cout):
        k1, k2, k3, k4 = jax.random.split(k, 4)
        bound = 1.0 / (cin ** 0.5)   # deterministic nn.Linear-style init
        return (jax.random.uniform(k1, (cout, cin), jnp.float32, -bound, bound),
                jax.random.uniform(k2, (cout,), jnp.float32, -bound, bound),
                jax.random.uniform(k3, (cout, cin), jnp.float32, -bound, bound),
                jax.random.uniform(k4, (cout,), jnp.float32, -bound, bound))

    # Case 1: T an exact multiple of 128 (fully dense tiles).
    k_p, k_x, key = jax.random.split(key, 3)
    B, Cin, Cout, spatial = 2, 4, 8, (8, 16)           # T = 128
    w_map, b_map, w_gate, b_gate = make_params(k_p, Cin, Cout)
    x = jax.random.normal(k_x, (B, Cin) + spatial, jnp.float32)
    out = jax.block_until_ready(glu_forward(x, w_map, b_map, w_gate, b_gate))
    ref = _reference(x, w_map, b_map, w_gate, b_gate)
    assert out.shape == (B, Cout) + spatial, out.shape
    assert jnp.allclose(out, ref, atol=1e-5, rtol=1e-5), "case1 mismatch vs reference"

    # Case 2: ragged time axis (T = 200, tT = 128 -> masked last tile), odd Cin.
    k_p, k_x, key = jax.random.split(key, 3)
    B, Cin, Cout, spatial = 3, 5, 8, (10, 20)          # T = 200
    w_map, b_map, w_gate, b_gate = make_params(k_p, Cin, Cout)
    x = jax.random.normal(k_x, (B, Cin) + spatial, jnp.float32)
    out = jax.block_until_ready(
        glu_forward(x, w_map, b_map, w_gate, b_gate, target_time_tile=128))
    ref = _reference(x, w_map, b_map, w_gate, b_gate)
    assert out.shape == (B, Cout) + spatial, out.shape
    assert jnp.allclose(out, ref, atol=1e-5, rtol=1e-5), "case2 mismatch vs reference"

    print("KERNEL_OK")
</pallas_src>

<mosaic_0001>
module attributes {stable_mosaic.version = 11 : i64} {
  func.func @_glu_kernel(%arg0: i32, %arg1: i32, %arg2: memref<1x4x128xf32, #tpu.memory_space<vmem>>, %arg3: memref<16x4xf32, #tpu.memory_space<vmem>>, %arg4: memref<16x1xf32, #tpu.memory_space<vmem>>, %arg5: memref<1x8x128xf32, #tpu.memory_space<vmem>>) attributes {dimension_semantics = [#tpu.dimension_semantics<parallel>, #tpu.dimension_semantics<parallel>], iteration_bounds = array<i64: 1, 2>, scalar_prefetch = 0 : i64, scratch_operands = 0 : i64, tpu.core_type = #tpu.core_type<tc>, window_params = [{transform_indices = @transform_0, window_bounds = array<i64: 1, 4, 128>}, {pipeline_mode = #tpu.pipeline_mode<synchronous>, transform_indices = @transform_1, window_bounds = array<i64: 16, 4>}, {pipeline_mode = #tpu.pipeline_mode<synchronous>, transform_indices = @transform_2, window_bounds = array<i64: 16, 1>}, {transform_indices = @transform_3, window_bounds = array<i64: 1, 8, 128>}]} {
    %c0 = arith.constant 0 : index
    %c0_0 = arith.constant 0 : index
    %c0_1 = arith.constant 0 : index
    %0 = vector.load %arg2[%c0, %c0_0, %c0_1] : memref<1x4x128xf32, #tpu.memory_space<vmem>>, vector<1x4x128xf32>
    %1 = vector.shape_cast %0 : vector<1x4x128xf32> to vector<4x128xf32>
    %c0_2 = arith.constant 0 : index
    %c0_3 = arith.constant 0 : index
    %2 = vector.load %arg3[%c0_2, %c0_3] : memref<16x4xf32, #tpu.memory_space<vmem>>, vector<16x4xf32>
    %cst = arith.constant dense<0.000000e+00> : vector<16x128xf32>
    %3 = tpu.matmul %2, %1, %cst {dimension_numbers = #tpu.dot_dimension_numbers<[1], [0], [0], [1], [0, 0, 1, 1], [], []>} : vector<16x4xf32>, vector<4x128xf32>, vector<16x128xf32> -> vector<16x128xf32>
    %c0_4 = arith.constant 0 : index
    %c0_5 = arith.constant 0 : index
    %4 = vector.load %arg4[%c0_4, %c0_5] : memref<16x1xf32, #tpu.memory_space<vmem>>, vector<16x1xf32>
    %5 = vector.broadcast %4 : vector<16x1xf32> to vector<16x128xf32>
    %6 = arith.addf %3, %5 : vector<16x128xf32>
    %7 = vector.extract_strided_slice %6 {offsets = [0, 0], sizes = [8, 128], strides = [1, 1]} : vector<16x128xf32> to vector<8x128xf32>
    %8 = vector.extract_strided_slice %6 {offsets = [8, 0], sizes = [8, 128], strides = [1, 1]} : vector<16x128xf32> to vector<8x128xf32>
    %9 = arith.negf %8 : vector<8x128xf32>
    %10 = math.exp %9 : vector<8x128xf32>
    %cst_6 = arith.constant 1.000000e+00 : f32
    %11 = vector.broadcast %cst_6 : f32 to vector<8x128xf32>
    %12 = arith.addf %11, %10 : vector<8x128xf32>
    %13 = arith.divf %11, %12 : vector<8x128xf32>
    %14 = arith.mulf %7, %13 : vector<8x128xf32>
    %c0_7 = arith.constant 0 : index
    %c0_8 = arith.constant 0 : index
    %c0_9 = arith.constant 0 : index
    %15 = vector.load %arg5[%c0_7, %c0_8, %c0_9] : memref<1x8x128xf32, #tpu.memory_space<vmem>>, vector<1x8x128xf32>
    %16 = vector.shape_cast %15 : vector<1x8x128xf32> to vector<8x128xf32>
    %17 = vector.shape_cast %14 : vector<8x128xf32> to vector<1x8x128xf32>
    tpu.vector_store %arg5[%c0_7, %c0_8, %c0_9], %17 {strides = array<i32>} : memref<1x8x128xf32, #tpu.memory_space<vmem>>, vector<1x8x128xf32>,
    return
  }
  func.func @transform_0(%arg0: i32, %arg1: i32) -> (i32, i32, i32) {
    %c0_i32 = arith.constant 0 : i32
    %c0_i32_0 = arith.constant 0 : i32
    return %arg1, %c0_i32, %arg0 : i32, i32, i32
  }
  func.func @transform_1(%arg0: i32, %arg1: i32) -> (i32, i32) {
    %c0_i32 = arith.constant 0 : i32
    %c0_i32_0 = arith.constant 0 : i32
    %c0_i32_1 = arith.constant 0 : i32
    return %c0_i32, %c0_i32_0 : i32, i32
  }
  func.func @transform_2(%arg0: i32, %arg1: i32) -> (i32, i32) {
    %c0_i32 = arith.constant 0 : i32
    %c0_i32_0 = arith.constant 0 : i32
    %c0_i32_1 = arith.constant 0 : i32
    return %c0_i32, %c0_i32_0 : i32, i32
  }
  func.func @transform_3(%arg0: i32, %arg1: i32) -> (i32, i32, i32) {
    %c0_i32 = arith.constant 0 : i32
    %c0_i32_0 = arith.constant 0 : i32
    return %arg1, %c0_i32, %arg0 : i32, i32, i32
  }
}

</mosaic_0001>

<bundles_post_ra>
// kernel: tpu_custom_call.1
= control target key start
LH: loop header
LB: loop body
LE: loop exit
PB: predicated region body
PF: predicated region fallthrough
CT: control target
= control target key end

     0   :  { %8 = vsyncpa [#allocation3], 0  ;;  %s636_s0 = inlined_call_operand.vmem [shape: f32[2,4,128], index: 0, kind: input, shape index: {}]   ;;  %s637_s1 = inlined_call_operand.vmem [shape: f32[16,4], index: 1, kind: input, shape index: {}]   ;;  %s638_s2 = inlined_call_operand.vmem [shape: f32[16,1], index: 2, kind: input, shape index: {}]   ;;  %s639_s3 = inlined_call_operand.hbm [shape: f32[2,8,128], index: 3, kind: output, shape index: {}]  }
   0x1   :  { %10 = vsyncpa [#allocation3 + $0x1], 0  ;;  %s527_s12 = smov 0   ;;  %s529_s13 = smov 0  }
   0x2   :  { %s531_s14 = smov 0   ;;  %s533_s15 = smov 0  }
   0x3   :  { %s535_s16 = smov 0   ;;  %s537_s17 = smov 0  }
   0x4 LB: > { %s349_s18 = sadd.s32 4294967295, %s504_s17   ;;  %s350_s19 = sadd.s32 4294967294, %s504_s17   ;;  %s504_s17 = sphi %s537_s17, %s16_s17   ;;  %s500_s16 = sphi %s535_s16, %s646_s16   ;;  %s496_s15 = sphi %s533_s15, %s645_s15   ;;  %s492_s14 = sphi %s531_s14, %s644_s14   ;;  %s488_s13 = sphi %s529_s13, %s643_s13   ;;  %s484_s12 = sphi %s527_s12, %s642_s12  }
   0x5   : > { %s25_s20 = sadd.s32 1, %s500_s16  ;;  %s107_s21 = sadd.s32 1, %s492_s14 }
   0x6   : > { %p26_p0 = scmp.ge.s32.totalorder %s25_s20, 2  ;;  %p117_p1 = scmp.ne.s32.totalorder %s492_s14, %s488_s13 }
   0x7   : > { %p118_p2 = scmp.eq.s32.totalorder %s349_s18, 1  ;;  %p123_p3 = scmp.ne.s32.totalorder %s488_s13, %s484_s12 }
   0x8   : > { %s648_s20 = smov (%p26_p0, %s25_s20), 0  ;;  %p124_p5 = scmp.eq.s32.totalorder %s350_s19, 1 }
   0x9   : > { %p567_p4 = por %p118_p2, %p117_p1  ;;  %s102_s23 = ssub.s32 %s500_s16, %s648_s20 }
   0xa   : > { %p353_p6 = scmp.ge.s32.totalorder %s504_s17, 1  ;;  %p105_p7 = scmp.eq.s32.totalorder %s102_s23, 0 }
   0xb   : > { %p574_p8 = por %p124_p5, %p123_p3  ;;  %p158_p9 = scmp.lt.s32.totalorder %s504_s17, 3 }
   0xc   : > { %s580_s25 = scalar_select %p105_p7, %s492_s14, %s107_s21  }
   0xd   : > { %p159_p10 = pnand %p353_p6, %p158_p9 }
   0xe   : > { %p184_p11 = scmp.lt.s32.totalorder (!%p159_p10), %s496_s15, 1  ;;  %s181_s18 = sand.u32 (!%p159_p10), 1, %s488_s13  }
   0xf   : > { %162 = sbr.rel (%p159_p10) target bundleno = 187 (0xbb), region = 32  ;;  %s354_s19 = sshll.u32 (!%p159_p10), %s181_s18, 3 }
  0x10   : > { %s361_s21 = sshll.u32 (!%p159_p10), %s496_s15, 3  ;;  %s446_s8 = scalar_lea.hbm (!%p159_p10), %s639_s3, 16 }
  0x11   : > { %s273_s27 = scalar_lea.hbm (!%p159_p10), %s639_s3, %s361_s21 }
  0x12   : > { %s277_s30 = sshll.u32 (!%p159_p10), %s273_s27, 4  ;;  %s278_s30 = int_to_ptr.hbm [resolvable:$true] %s277_s30 }
  0x13   : > { %s440_s4 = sshra.s32 (!%p159_p10), %s278_s30, 4  ;;  %s441_s4 = int_to_ptr.hbm [resolvable:$true] %s440_s4 }
  0x14   : > { %v506_v0 = vmov 0   ;;  %v195_v1 = vld [vmem:[%s638_s2 + $0x8] sm:$0xff]  ;;  %s185_s28 = scalar_select %p184_p11, %s496_s15, 1  ;;  %vm213_vm0 = vcmask 1043456   ;;  %v192_v2 = vld [vmem:[%s637_s1] sm:$0xff]  ;;  %vm206_vm1 = vcmask 31744  }
  0x15   : > { %421 = vset.pattern.permute.xlu0 %v506_v0  ;;  %v193_v3 = vld [vmem:[%s637_s1 + $0x8] sm:$0xff]  ;;  %v194_v5 = vld [vmem:[%s638_s2] sm:$0xff]  ;;  %s262_s15 = scalar_lea.sflag [#allocation3], %s181_s18  ;;  %p447_p1 = scmp.lt.s32.totalorder %s441_s4, %s639_s3 }
  0x16   : > { %203 = vperm.xlu0 %421, %v195_v1   ;;  %s355_s29 = sshll.u32 %s185_s28, 2  ;;  %s183_s28 = scalar_lea.vmem [#allocation2], %s354_s19 }
  0x17   : > { %s190_s5 = scalar_lea.vmem %s636_s0, %s355_s29  ;;  %s275_s29 = sshll.u32 %s183_s28, 4  ;;  %s276_s29 = int_to_ptr.vmem [resolvable:$true] %s275_s29 }
  0x18   : > { %v191_v4 = vld [vmem:[%s190_s5] sm:$0xf]  ;;  %s442_s5 = scalar_lea.hbm %s441_s4, 8 }
  0x19   : > { %356 = vmatpush.msk.msra.mxu0 %vm213_vm0, %v191_v4  ;;  %364 = vmatpush.msk.msra.mxu1 %vm213_vm0, %v191_v4  ;;  %p443_p12 = scmp.ne.s32.totalorder %s441_s4, %s442_s5  ;;  %p448_p2 = scmp.lt.s32.totalorder %s446_s8, %s442_s5 }
  0x1a   : > { %357 = vmatmul.msk.f32.vlgmr.msra.gmra.mxu0 %vm206_vm1, %v192_v2  ;;  %358 = vmatmul.msk.f32.vlgmr.msra.gmra.mxu1 %vm206_vm1, %v193_v3 }
  0x1b   : > { %p444_p13 = pnand %p443_p12, %p567_p4  ;;  %p449_p3 = por %p448_p2, %p447_p1 }
  0x1d   : > { %p445_p0 = pneg %p444_p13 }
  0x1e   : > { %198 = vperm.xlu0 %421, %v194_v5  }
  0x1f   : > { %p450_p5 = pnand %p449_p3, %p445_p0 }
  0x88   : > { %v204_v6 = vpop.permute.xlu0 %203 }
  0x90   : > { %v199_v18 = vpop.permute.xlu0 %198 }
  0x97   : > { %v237_v7 = vpop.f32.mrf.mxu1  ;;  %v234_v19 = vpop.f32.mrf.mxu0 }
  0x98   : > { %v238_v8 = vadd.f32 %v237_v7, %v204_v6  ;;  %v235_v22 = vadd.f32 %v234_v19, %v199_v18 }
  0x9a   : > { %v359_v9 = vmul.f32 -1.442695, %v238_v8 }
  0x9c   : > { %422 = vpow2.f32 %v359_v9 }
  0xa2   : > { %v423_v10 = vpop.eup %422 }
  0xa3   : > { %v243_v11 = vadd.f32 1.0, %v423_v10 }
  0xa5   : > { %424 = vrcp.f32 %v243_v11  ;;  %v255_v15 = vand.u32 2147483648, %v243_v11  ;;  %v253_v17 = vand.u32 2147483647, %v243_v11  ;;  %vm249_vm3 = vweird.f32 %v243_v11 }
  0xa7   : > { %v256_v21 = vor.u32 1.1754944e-38, %v255_v15  ;;  %vm254_vm5 = vcmp.eq.f32.partialorder %v253_v17, 8.507059e+37 }
  0xab   : > { %v425_v12 = vpop.eup %424 }
  0xac   : > { %v245_v13 = vmul.f32 %v425_v12, %v243_v11  ;;  %vm250_vm2 = vweird.f32 %v425_v12 }
  0xad   : > { %vm251_vm4 = vmor %vm249_vm3, %vm250_vm2 }
  0xae   : > { %v246_v14 = vsub.f32 1.0, %v245_v13 }
  0xb0   : > { %v247_v16 = vmul.f32 %v425_v12, %v246_v14 }
  0xb2   : > { %v248_v20 = vadd.f32 %v425_v12, %v247_v16 }
  0xb4   : > { %v252_v23 = vsel %vm251_vm4, %v425_v12, %v248_v20 }
  0xb5   : > { %v257_v24 = vsel %vm254_vm5, %v256_v21, %v252_v23 }
  0xb6   : > { %v259_v25 = vmul.f32 %v257_v24, %v235_v22 }
  0xb8   : > { %260 = vst [vmem:[%s183_s28] sm:$0xff] %v259_v25 }
  0xb9   : > { %453 = shalt.err (!%p450_p5)
}
  0xba   : > { %365 = dma.vmem_to_hbm [thread:$0]  (%p567_p4), %s276_s29, 128, %s278_s30, %s262_s15  }
  0xbb PF: > { %p371_p6 = scmp.ge.s32.totalorder %s504_s17, 2  ;;  %s289_s11 = sand.u32 1, %s484_s12  }
  0xbc   : > { %s290_s18 = scalar_lea.sflag [#allocation3], %s289_s11 }
  0xbd   : > { %p368_p7 = pnand %p371_p6, %p574_p8 }
  0xbf   : > { %p369_p9 = pneg %p368_p7 }
  0xc1   : > { %479 = dma.done.wait (%p369_p9), %s290_s18, 128  }
  0xc2   : > { %481 = vsyncadd (%p369_p9), %s290_s18, 4294967168  ;;  %s16_s17 = sadd.s32 1, %s504_s17   ;;  %s642_s12 = smov %s488_s13 }
  0xc3   : > { %p13_p10 = scmp.ge.s32.totalorder %s16_s17, 4   ;;  %s643_s13 = smov %s492_s14 }
  0xc4   : > { %s644_s14 = smov %s580_s25  ;;  %s645_s15 = smov %s500_s16 }
  0xc5   : > { %s646_s16 = smov %s648_s20  ;;  %15 = sbr.rel (!%p13_p10) target bundleno = 4 (0x4), region = 67 }
  0xca   :  { %296 = vsyncpa [#allocation3], 1 }
  0xcb   :  { %298 = vsyncpa [#allocation3 + $0x1], 1 }

</bundles_post_ra>
